<compile_context>
chip_gen: v7x
topology: tpu7x:2x2x1
jax: 0.10.0
libtpu: 0.0.40
codegen_flags: <defaults>
</compile_context>

<pallas_src>
import jax
import jax.numpy as jnp
from jax import lax
from jax.experimental import pallas as pl
from jax.experimental.pallas import tpu as pltpu


def _round_up(v, m):
    return (v + m - 1) // m * m


def _gru_kernel(x_ref, h0_ref, wi_ref, bi_ref, wh_ref, out_ref, h_ref, gi_ref):
    """One T-chunk of the GRU recurrence.

    x_ref  : (Tc, Bp, Ip)    bf16  time-major input chunk
    h0_ref : (Bp, Hp)        f32   initial hidden state
    wi_ref : (Ip, 3*Hp)      bf16  [W_ir^T | W_iz^T | W_in^T] (lane-padded blocks)
    bi_ref : (1, 3*Hp)       f32   [b_ir | b_iz | b_in]
    wh_ref : (Hp, 3*Hp)      bf16  [W_hr^T | W_hz^T | W_hn^T]
    out_ref: (Tc, Bp, Hp)    f32   hidden states for this chunk
    h_ref  : (Bp, Hp)        f32   persistent hidden-state carry (VMEM scratch)
    gi_ref : (Tc, Bp, 3*Hp)  f32   hoisted input projection (VMEM scratch)
    """
    c = pl.program_id(0)
    Tc, Bp, Ip = x_ref.shape
    Hp = wh_ref.shape[0]

    @pl.when(c == 0)
    def _():
        h_ref[...] = h0_ref[...]

    # Phase 1: hoisted input projection for the whole chunk — one large,
    # well-shaped MXU matmul, off the serial critical path of the recurrence.
    gi = jnp.dot(x_ref[...].reshape(Tc * Bp, Ip), wi_ref[...],
                 preferred_element_type=jnp.float32)
    gi_ref[...] = (gi + bi_ref[...]).reshape(Tc, Bp, 3 * Hp)

    # Phase 2: serial recurrence; only (Bp,Hp) @ (Hp,3Hp) per step remains.
    def step(t, h):
        g = gi_ref[t]                                            # (Bp, 3Hp) f32
        gh = jnp.dot(h.astype(jnp.bfloat16), wh_ref[...],
                     preferred_element_type=jnp.float32)         # (Bp, 3Hp) f32
        r = jax.nn.sigmoid(g[:, 0:Hp] + gh[:, 0:Hp])
        z = jax.nn.sigmoid(g[:, Hp:2 * Hp] + gh[:, Hp:2 * Hp])
        n = jnp.tanh(g[:, 2 * Hp:3 * Hp] + r * gh[:, 2 * Hp:3 * Hp])
        h = (1.0 - z) * n + z * h
        out_ref[t] = h
        return h

    h_ref[...] = lax.fori_loop(0, Tc, step, h_ref[...], unroll=True)


def _pad_params(params, i_pad, h_pad):
    """Zero-pad each gate block to lane-aligned boundaries; cast weights to bf16.

    Zero padding is recurrence-stable: padded hidden columns start at 0 and
    stay 0 (r=z=0.5, n=0 => h_pad -> 0.5*h_pad -> 0).
    """
    wi, bi, wh = params["wi"], params["bi"], params["wh"]
    I, three_h = wi.shape
    H = three_h // 3
    wi_p = jnp.zeros((i_pad, 3 * h_pad), jnp.float32)
    bi_p = jnp.zeros((1, 3 * h_pad), jnp.float32)
    wh_p = jnp.zeros((h_pad, 3 * h_pad), jnp.float32)
    for g in range(3):
        wi_p = wi_p.at[:I, g * h_pad:g * h_pad + H].set(wi[:, g * H:(g + 1) * H])
        bi_p = bi_p.at[:, g * h_pad:g * h_pad + H].set(bi[:, g * H:(g + 1) * H])
        wh_p = wh_p.at[:H, g * h_pad:g * h_pad + H].set(wh[:, g * H:(g + 1) * H])
    return wi_p.astype(jnp.bfloat16), bi_p, wh_p.astype(jnp.bfloat16)


def abstract_gru(x, params, hx=None, max_length=None, *, t_chunk=8):
    """AbstractGRU.forward: x (B, T, I) f32 -> (output (B, T, H), hx (B, H))."""
    B, T_in, I = x.shape
    H = params["wh"].shape[0]
    T = T_in if max_length is None else max_length
    x = x[:, :T, :]

    Hp = _round_up(H, 128)        # lane-aligned gate slices & lane-dense stores
    Bp = _round_up(B, 8)          # f32 sublane alignment
    Ip = _round_up(I, 128)
    Tc = max(1, min(t_chunk, T))
    Tp = _round_up(T, Tc)
    nc = Tp // Tc

    wi_p, bi_p, wh_p = _pad_params(params, Ip, Hp)

    x_tbi = jnp.transpose(x, (1, 0, 2)).astype(jnp.bfloat16)        # (T, B, I)
    x_p = jnp.zeros((Tp, Bp, Ip), jnp.bfloat16).at[:T, :B, :I].set(x_tbi)
    h0_p = jnp.zeros((Bp, Hp), jnp.float32)
    if hx is not None:
        h0_p = h0_p.at[:B, :H].set(hx.astype(jnp.float32))

    # Rough VMEM budget: double-buffered pipelined blocks + weights + scratch,
    # with 2x headroom; clamped to stay portable across v5e/v6e (128 MiB) and
    # v7x (64 MiB physical).
    vmem_need = (2 * Tc * Bp * Ip * 2 + 2 * Tc * Bp * Hp * 4
                 + 2 * (Ip * 3 * Hp * 2 + Hp * 3 * Hp * 2 + 3 * Hp * 4 + Bp * Hp * 4)
                 + Bp * Hp * 4 + Tc * Bp * 3 * Hp * 4)
    vmem_limit = int(min(max(2 * vmem_need, 16 * 2**20), 64 * 2**20))

    out_p = pl.pallas_call(
        _gru_kernel,
        out_shape=jax.ShapeDtypeStruct((Tp, Bp, Hp), jnp.float32),
        grid=(nc,),
        in_specs=[
            pl.BlockSpec((Tc, Bp, Ip), lambda c: (c, 0, 0)),        # x chunk (pipelined)
            pl.BlockSpec((Bp, Hp), lambda c: (0, 0)),               # h0 (resident)
            pl.BlockSpec((Ip, 3 * Hp), lambda c: (0, 0)),           # wi (resident)
            pl.BlockSpec((1, 3 * Hp), lambda c: (0, 0)),            # bi (resident)
            pl.BlockSpec((Hp, 3 * Hp), lambda c: (0, 0)),           # wh (resident)
        ],
        out_specs=pl.BlockSpec((Tc, Bp, Hp), lambda c: (c, 0, 0)),  # lane-dense output
        scratch_shapes=[
            pltpu.VMEM((Bp, Hp), jnp.float32),          # persistent hidden-state carry
            pltpu.VMEM((Tc, Bp, 3 * Hp), jnp.float32),  # hoisted input projection
        ],
        compiler_params=pltpu.CompilerParams(
            dimension_semantics=("arbitrary",),         # serial carry over T-chunks
            vmem_limit_bytes=vmem_limit),
    )(x_p, h0_p, wi_p, bi_p, wh_p)

    output = jnp.transpose(out_p[:T, :B, :H], (1, 0, 2))            # (B, T, H)
    hx_out = out_p[T - 1, :B, :H]                                   # final hidden (B, H)
    return output, hx_out


def make_params(key, input_size, hidden_size):
    """nn.Linear-style uniform(-1/sqrt(fan_in), 1/sqrt(fan_in)) init.

    Weights stored pre-transposed to (in, out); gate order is [r | z | n].
    bias_hh is absent (module default bias_hh=False).
    """
    ks = jax.random.split(key, 9)
    si = 1.0 / jnp.sqrt(input_size)
    sh = 1.0 / jnp.sqrt(hidden_size)

    def u(k, shape, s):
        return jax.random.uniform(k, shape, jnp.float32, -s, s)

    w_ir, w_iz, w_in = (u(ks[i], (input_size, hidden_size), si) for i in range(3))
    b_ir, b_iz, b_in = (u(ks[3 + i], (hidden_size,), si) for i in range(3))
    w_hr, w_hz, w_hn = (u(ks[6 + i], (hidden_size, hidden_size), sh) for i in range(3))

    wi = jnp.concatenate([w_ir, w_iz, w_in], axis=1)                # (I, 3H)
    bi = jnp.concatenate([b_ir, b_iz, b_in]).reshape(1, -1)         # (1, 3H)
    wh = jnp.concatenate([w_hr, w_hz, w_hn], axis=1)                # (H, 3H)
    return {"wi": wi, "bi": bi, "wh": wh}


def _reference(x, params, hx=None, max_length=None):
    """Pure-JAX f32 replica of AbstractGRU.forward with a standard GRU cell."""
    B, T, I = x.shape
    H = params["wh"].shape[0]
    wi, bi, wh = params["wi"], params["bi"], params["wh"]
    if max_length is None:
        max_length = T
    if hx is None:
        hx = jnp.zeros((B, H), jnp.float32)
    hi = lax.Precision.HIGHEST
    outs = []
    for t in range(max_length):
        gi = jnp.dot(x[:, t, :], wi, precision=hi) + bi
        gh = jnp.dot(hx, wh, precision=hi)
        r = jax.nn.sigmoid(gi[:, 0:H] + gh[:, 0:H])
        z = jax.nn.sigmoid(gi[:, H:2 * H] + gh[:, H:2 * H])
        n = jnp.tanh(gi[:, 2 * H:3 * H] + r * gh[:, 2 * H:3 * H])
        hx = (1.0 - z) * n + z * hx
        outs.append(hx[:, None, :])
    return jnp.concatenate(outs, axis=1), hx


if __name__ == "__main__":
    B, T, I, H = 2, 8, 16, 32
    key = jax.random.PRNGKey(0)
    kx, kp = jax.random.split(key)

    x = jax.random.normal(kx, (B, T, I), jnp.float32)
    params = make_params(kp, I, H)

    # t_chunk=4 -> two T-chunks, exercising the pipelined grid and the
    # persistent hidden-state carry across grid steps.
    output, hx = abstract_gru(x, params, t_chunk=4)
    jax.block_until_ready((output, hx))

    ref_out, ref_hx = _reference(x, params)
    assert output.shape == (B, T, H)
    assert hx.shape == (B, H)
    # bf16 MXU operands (f32 accumulation) -> loosened tolerance vs f32 reference.
    assert jnp.allclose(output, ref_out, atol=5e-2, rtol=1e-2), "output mismatch vs reference"
    assert jnp.allclose(hx, ref_hx, atol=5e-2, rtol=1e-2), "final hidden mismatch vs reference"

    print("KERNEL_OK")
</pallas_src>

<mosaic_0001>
module attributes {stable_mosaic.version = 11 : i64} {
  func.func @_gru_kernel(%arg0: i32, %arg1: memref<4x8x128xbf16, #tpu.memory_space<vmem>>, %arg2: memref<8x128xf32, #tpu.memory_space<vmem>>, %arg3: memref<128x384xbf16, #tpu.memory_space<vmem>>, %arg4: memref<1x384xf32, #tpu.memory_space<vmem>>, %arg5: memref<128x384xbf16, #tpu.memory_space<vmem>>, %arg6: memref<4x8x128xf32, #tpu.memory_space<vmem>>, %arg7: memref<8x128xf32, #tpu.memory_space<vmem>>, %arg8: memref<4x8x384xf32, #tpu.memory_space<vmem>>) attributes {dimension_semantics = [#tpu.dimension_semantics<arbitrary>], iteration_bounds = array<i64: 2>, scalar_prefetch = 0 : i64, scratch_operands = 2 : i64, tpu.core_type = #tpu.core_type<tc>, window_params = [{transform_indices = @transform_0, window_bounds = array<i64: 4, 8, 128>}, {pipeline_mode = #tpu.pipeline_mode<synchronous>, transform_indices = @transform_1, window_bounds = array<i64: 8, 128>}, {pipeline_mode = #tpu.pipeline_mode<synchronous>, transform_indices = @transform_2, window_bounds = array<i64: 128, 384>}, {pipeline_mode = #tpu.pipeline_mode<synchronous>, transform_indices = @transform_3, window_bounds = array<i64: 1, 384>}, {pipeline_mode = #tpu.pipeline_mode<synchronous>, transform_indices = @transform_4, window_bounds = array<i64: 128, 384>}, {transform_indices = @transform_5, window_bounds = array<i64: 4, 8, 128>}]} {
    %c0_i32 = arith.constant 0 : i32
    %0 = arith.cmpi eq, %arg0, %c0_i32 : i32
    %1 = arith.extui %0 : i1 to i32
    %c0_i32_0 = arith.constant 0 : i32
    %2 = arith.cmpi ne, %1, %c0_i32_0 : i32
    scf.if %2 {
      %c0_55 = arith.constant 0 : index
      %c0_56 = arith.constant 0 : index
      %158 = vector.load %arg2[%c0_55, %c0_56] : memref<8x128xf32, #tpu.memory_space<vmem>>, vector<8x128xf32>
      %c0_57 = arith.constant 0 : index
      %c0_58 = arith.constant 0 : index
      %159 = vector.load %arg7[%c0_57, %c0_58] : memref<8x128xf32, #tpu.memory_space<vmem>>, vector<8x128xf32>
      tpu.vector_store %arg7[%c0_57, %c0_58], %158 {strides = array<i32>} : memref<8x128xf32, #tpu.memory_space<vmem>>, vector<8x128xf32>,
    } else {
    }
    %c0 = arith.constant 0 : index
    %c0_1 = arith.constant 0 : index
    %c0_2 = arith.constant 0 : index
    %3 = vector.load %arg1[%c0, %c0_1, %c0_2] : memref<4x8x128xbf16, #tpu.memory_space<vmem>>, vector<4x8x128xbf16>
    %4 = vector.shape_cast %3 : vector<4x8x128xbf16> to vector<32x128xbf16>
    %c0_3 = arith.constant 0 : index
    %c0_4 = arith.constant 0 : index
    %5 = vector.load %arg3[%c0_3, %c0_4] : memref<128x384xbf16, #tpu.memory_space<vmem>>, vector<128x384xbf16>
    %cst = arith.constant dense<0.000000e+00> : vector<32x384xf32>
    %6 = tpu.matmul %4, %5, %cst {dimension_numbers = #tpu.dot_dimension_numbers<[1], [0], [0], [1], [0, 0, 1, 1], [], []>} : vector<32x128xbf16>, vector<128x384xbf16>, vector<32x384xf32> -> vector<32x384xf32>
    %c0_5 = arith.constant 0 : index
    %c0_6 = arith.constant 0 : index
    %7 = vector.load %arg4[%c0_5, %c0_6] : memref<1x384xf32, #tpu.memory_space<vmem>>, vector<1x384xf32>
    %8 = vector.broadcast %7 : vector<1x384xf32> to vector<32x384xf32>
    %9 = arith.addf %6, %8 : vector<32x384xf32>
    %10 = vector.shape_cast %9 : vector<32x384xf32> to vector<4x8x384xf32>
    %c0_7 = arith.constant 0 : index
    %c0_8 = arith.constant 0 : index
    %c0_9 = arith.constant 0 : index
    %11 = vector.load %arg8[%c0_7, %c0_8, %c0_9] : memref<4x8x384xf32, #tpu.memory_space<vmem>>, vector<4x8x384xf32>
    tpu.vector_store %arg8[%c0_7, %c0_8, %c0_9], %10 {strides = array<i32>} : memref<4x8x384xf32, #tpu.memory_space<vmem>>, vector<4x8x384xf32>,
    %c0_10 = arith.constant 0 : index
    %c0_11 = arith.constant 0 : index
    %12 = vector.load %arg7[%c0_10, %c0_11] : memref<8x128xf32, #tpu.memory_space<vmem>>, vector<8x128xf32>
    %c0_i32_12 = arith.constant 0 : i32
    %13 = arith.index_cast %c0_i32_12 : i32 to index
    %c0_13 = arith.constant 0 : index
    %c0_14 = arith.constant 0 : index
    %14 = vector.load %arg8[%13, %c0_13, %c0_14] : memref<4x8x384xf32, #tpu.memory_space<vmem>>, vector<1x8x384xf32>
    %15 = vector.shape_cast %14 : vector<1x8x384xf32> to vector<8x384xf32>
    %16 = arith.truncf %12 : vector<8x128xf32> to vector<8x128xbf16>
    %c0_15 = arith.constant 0 : index
    %c0_16 = arith.constant 0 : index
    %17 = vector.load %arg5[%c0_15, %c0_16] : memref<128x384xbf16, #tpu.memory_space<vmem>>, vector<128x384xbf16>
    %cst_17 = arith.constant dense<0.000000e+00> : vector<8x384xf32>
    %18 = tpu.matmul %16, %17, %cst_17 {dimension_numbers = #tpu.dot_dimension_numbers<[1], [0], [0], [1], [0, 0, 1, 1], [], []>} : vector<8x128xbf16>, vector<128x384xbf16>, vector<8x384xf32> -> vector<8x384xf32>
    %19 = vector.extract_strided_slice %15 {offsets = [0, 0], sizes = [8, 128], strides = [1, 1]} : vector<8x384xf32> to vector<8x128xf32>
    %20 = vector.extract_strided_slice %18 {offsets = [0, 0], sizes = [8, 128], strides = [1, 1]} : vector<8x384xf32> to vector<8x128xf32>
    %21 = arith.addf %19, %20 : vector<8x128xf32>
    %22 = arith.negf %21 : vector<8x128xf32>
    %23 = math.exp %22 : vector<8x128xf32>
    %cst_18 = arith.constant 1.000000e+00 : f32
    %24 = vector.broadcast %cst_18 : f32 to vector<8x128xf32>
    %25 = arith.addf %24, %23 : vector<8x128xf32>
    %26 = arith.divf %24, %25 : vector<8x128xf32>
    %27 = vector.extract_strided_slice %15 {offsets = [0, 128], sizes = [8, 128], strides = [1, 1]} : vector<8x384xf32> to vector<8x128xf32>
    %28 = vector.extract_strided_slice %18 {offsets = [0, 128], sizes = [8, 128], strides = [1, 1]} : vector<8x384xf32> to vector<8x128xf32>
    %29 = arith.addf %27, %28 : vector<8x128xf32>
    %30 = arith.negf %29 : vector<8x128xf32>
    %31 = math.exp %30 : vector<8x128xf32>
    %cst_19 = arith.constant 1.000000e+00 : f32
    %32 = vector.broadcast %cst_19 : f32 to vector<8x128xf32>
    %33 = arith.addf %32, %31 : vector<8x128xf32>
    %34 = arith.divf %32, %33 : vector<8x128xf32>
    %35 = vector.extract_strided_slice %15 {offsets = [0, 256], sizes = [8, 128], strides = [1, 1]} : vector<8x384xf32> to vector<8x128xf32>
    %36 = vector.extract_strided_slice %18 {offsets = [0, 256], sizes = [8, 128], strides = [1, 1]} : vector<8x384xf32> to vector<8x128xf32>
    %37 = arith.mulf %26, %36 : vector<8x128xf32>
    %38 = arith.addf %35, %37 : vector<8x128xf32>
    %39 = math.tanh %38 : vector<8x128xf32>
    %cst_20 = arith.constant 1.000000e+00 : f32
    %40 = vector.broadcast %cst_20 : f32 to vector<8x128xf32>
    %41 = arith.subf %40, %34 : vector<8x128xf32>
    %42 = arith.mulf %41, %39 : vector<8x128xf32>
    %43 = arith.mulf %34, %12 : vector<8x128xf32>
    %44 = arith.addf %42, %43 : vector<8x128xf32>
    %45 = arith.index_cast %c0_i32_12 : i32 to index
    %c0_21 = arith.constant 0 : index
    %c0_22 = arith.constant 0 : index
    %46 = vector.load %arg6[%45, %c0_21, %c0_22] : memref<4x8x128xf32, #tpu.memory_space<vmem>>, vector<1x8x128xf32>
    %47 = vector.shape_cast %46 : vector<1x8x128xf32> to vector<8x128xf32>
    %48 = vector.shape_cast %44 : vector<8x128xf32> to vector<1x8x128xf32>
    tpu.vector_store %arg6[%45, %c0_21, %c0_22], %48 {strides = array<i32>} : memref<4x8x128xf32, #tpu.memory_space<vmem>>, vector<1x8x128xf32>,
    %c1_i32 = arith.constant 1 : i32
    %49 = arith.index_cast %c1_i32 : i32 to index
    %c0_23 = arith.constant 0 : index
    %c0_24 = arith.constant 0 : index
    %50 = vector.load %arg8[%49, %c0_23, %c0_24] : memref<4x8x384xf32, #tpu.memory_space<vmem>>, vector<1x8x384xf32>
    %51 = vector.shape_cast %50 : vector<1x8x384xf32> to vector<8x384xf32>
    %52 = arith.truncf %44 : vector<8x128xf32> to vector<8x128xbf16>
    %c0_25 = arith.constant 0 : index
    %c0_26 = arith.constant 0 : index
    %53 = vector.load %arg5[%c0_25, %c0_26] : memref<128x384xbf16, #tpu.memory_space<vmem>>, vector<128x384xbf16>
    %cst_27 = arith.constant dense<0.000000e+00> : vector<8x384xf32>
    %54 = tpu.matmul %52, %53, %cst_27 {dimension_numbers = #tpu.dot_dimension_numbers<[1], [0], [0], [1], [0, 0, 1, 1], [], []>} : vector<8x128xbf16>, vector<128x384xbf16>, vector<8x384xf32> -> vector<8x384xf32>
    %55 = vector.extract_strided_slice %51 {offsets = [0, 0], sizes = [8, 128], strides = [1, 1]} : vector<8x384xf32> to vector<8x128xf32>
    %56 = vector.extract_strided_slice %54 {offsets = [0, 0], sizes = [8, 128], strides = [1, 1]} : vector<8x384xf32> to vector<8x128xf32>
    %57 = arith.addf %55, %56 : vector<8x128xf32>
    %58 = arith.negf %57 : vector<8x128xf32>
    %59 = math.exp %58 : vector<8x128xf32>
    %cst_28 = arith.constant 1.000000e+00 : f32
    %60 = vector.broadcast %cst_28 : f32 to vector<8x128xf32>
    %61 = arith.addf %60, %59 : vector<8x128xf32>
    %62 = arith.divf %60, %61 : vector<8x128xf32>
    %63 = vector.extract_strided_slice %51 {offsets = [0, 128], sizes = [8, 128], strides = [1, 1]} : vector<8x384xf32> to vector<8x128xf32>
    %64 = vector.extract_strided_slice %54 {offsets = [0, 128], sizes = [8, 128], strides = [1, 1]} : vector<8x384xf32> to vector<8x128xf32>
    %65 = arith.addf %63, %64 : vector<8x128xf32>
    %66 = arith.negf %65 : vector<8x128xf32>
    %67 = math.exp %66 : vector<8x128xf32>
    %cst_29 = arith.constant 1.000000e+00 : f32
    %68 = vector.broadcast %cst_29 : f32 to vector<8x128xf32>
    %69 = arith.addf %68, %67 : vector<8x128xf32>
    %70 = arith.divf %68, %69 : vector<8x128xf32>
    %71 = vector.extract_strided_slice %51 {offsets = [0, 256], sizes = [8, 128], strides = [1, 1]} : vector<8x384xf32> to vector<8x128xf32>
    %72 = vector.extract_strided_slice %54 {offsets = [0, 256], sizes = [8, 128], strides = [1, 1]} : vector<8x384xf32> to vector<8x128xf32>
    %73 = arith.mulf %62, %72 : vector<8x128xf32>
    %74 = arith.addf %71, %73 : vector<8x128xf32>
    %75 = math.tanh %74 : vector<8x128xf32>
    %cst_30 = arith.constant 1.000000e+00 : f32
    %76 = vector.broadcast %cst_30 : f32 to vector<8x128xf32>
    %77 = arith.subf %76, %70 : vector<8x128xf32>
    %78 = arith.mulf %77, %75 : vector<8x128xf32>
    %79 = arith.mulf %70, %44 : vector<8x128xf32>
    %80 = arith.addf %78, %79 : vector<8x128xf32>
    %81 = arith.index_cast %c1_i32 : i32 to index
    %c0_31 = arith.constant 0 : index
    %c0_32 = arith.constant 0 : index
    %82 = vector.load %arg6[%81, %c0_31, %c0_32] : memref<4x8x128xf32, #tpu.memory_space<vmem>>, vector<1x8x128xf32>
    %83 = vector.shape_cast %82 : vector<1x8x128xf32> to vector<8x128xf32>
    %84 = vector.shape_cast %80 : vector<8x128xf32> to vector<1x8x128xf32>
    tpu.vector_store %arg6[%81, %c0_31, %c0_32], %84 {strides = array<i32>} : memref<4x8x128xf32, #tpu.memory_space<vmem>>, vector<1x8x128xf32>,
    %c2_i32 = arith.constant 2 : i32
    %85 = arith.index_cast %c2_i32 : i32 to index
    %c0_33 = arith.constant 0 : index
    %c0_34 = arith.constant 0 : index
    %86 = vector.load %arg8[%85, %c0_33, %c0_34] : memref<4x8x384xf32, #tpu.memory_space<vmem>>, vector<1x8x384xf32>
    %87 = vector.shape_cast %86 : vector<1x8x384xf32> to vector<8x384xf32>
    %88 = arith.truncf %80 : vector<8x128xf32> to vector<8x128xbf16>
    %c0_35 = arith.constant 0 : index
    %c0_36 = arith.constant 0 : index
    %89 = vector.load %arg5[%c0_35, %c0_36] : memref<128x384xbf16, #tpu.memory_space<vmem>>, vector<128x384xbf16>
    %cst_37 = arith.constant dense<0.000000e+00> : vector<8x384xf32>
    %90 = tpu.matmul %88, %89, %cst_37 {dimension_numbers = #tpu.dot_dimension_numbers<[1], [0], [0], [1], [0, 0, 1, 1], [], []>} : vector<8x128xbf16>, vector<128x384xbf16>, vector<8x384xf32> -> vector<8x384xf32>
    %91 = vector.extract_strided_slice %87 {offsets = [0, 0], sizes = [8, 128], strides = [1, 1]} : vector<8x384xf32> to vector<8x128xf32>
    %92 = vector.extract_strided_slice %90 {offsets = [0, 0], sizes = [8, 128], strides = [1, 1]} : vector<8x384xf32> to vector<8x128xf32>
    %93 = arith.addf %91, %92 : vector<8x128xf32>
    %94 = arith.negf %93 : vector<8x128xf32>
    %95 = math.exp %94 : vector<8x128xf32>
    %cst_38 = arith.constant 1.000000e+00 : f32
    %96 = vector.broadcast %cst_38 : f32 to vector<8x128xf32>
    %97 = arith.addf %96, %95 : vector<8x128xf32>
    %98 = arith.divf %96, %97 : vector<8x128xf32>
    %99 = vector.extract_strided_slice %87 {offsets = [0, 128], sizes = [8, 128], strides = [1, 1]} : vector<8x384xf32> to vector<8x128xf32>
    %100 = vector.extract_strided_slice %90 {offsets = [0, 128], sizes = [8, 128], strides = [1, 1]} : vector<8x384xf32> to vector<8x128xf32>
    %101 = arith.addf %99, %100 : vector<8x128xf32>
    %102 = arith.negf %101 : vector<8x128xf32>
    %103 = math.exp %102 : vector<8x128xf32>
    %cst_39 = arith.constant 1.000000e+00 : f32
    %104 = vector.broadcast %cst_39 : f32 to vector<8x128xf32>
    %105 = arith.addf %104, %103 : vector<8x128xf32>
    %106 = arith.divf %104, %105 : vector<8x128xf32>
    %107 = vector.extract_strided_slice %87 {offsets = [0, 256], sizes = [8, 128], strides = [1, 1]} : vector<8x384xf32> to vector<8x128xf32>
    %108 = vector.extract_strided_slice %90 {offsets = [0, 256], sizes = [8, 128], strides = [1, 1]} : vector<8x384xf32> to vector<8x128xf32>
    %109 = arith.mulf %98, %108 : vector<8x128xf32>
    %110 = arith.addf %107, %109 : vector<8x128xf32>
    %111 = math.tanh %110 : vector<8x128xf32>
    %cst_40 = arith.constant 1.000000e+00 : f32
    %112 = vector.broadcast %cst_40 : f32 to vector<8x128xf32>
    %113 = arith.subf %112, %106 : vector<8x128xf32>
    %114 = arith.mulf %113, %111 : vector<8x128xf32>
    %115 = arith.mulf %106, %80 : vector<8x128xf32>
    %116 = arith.addf %114, %115 : vector<8x128xf32>
    %117 = arith.index_cast %c2_i32 : i32 to index
    %c0_41 = arith.constant 0 : index
    %c0_42 = arith.constant 0 : index
    %118 = vector.load %arg6[%117, %c0_41, %c0_42] : memref<4x8x128xf32, #tpu.memory_space<vmem>>, vector<1x8x128xf32>
    %119 = vector.shape_cast %118 : vector<1x8x128xf32> to vector<8x128xf32>
    %120 = vector.shape_cast %116 : vector<8x128xf32> to vector<1x8x128xf32>
    tpu.vector_store %arg6[%117, %c0_41, %c0_42], %120 {strides = array<i32>} : memref<4x8x128xf32, #tpu.memory_space<vmem>>, vector<1x8x128xf32>,
    %c3_i32 = arith.constant 3 : i32
    %121 = arith.index_cast %c3_i32 : i32 to index
    %c0_43 = arith.constant 0 : index
    %c0_44 = arith.constant 0 : index
    %122 = vector.load %arg8[%121, %c0_43, %c0_44] : memref<4x8x384xf32, #tpu.memory_space<vmem>>, vector<1x8x384xf32>
    %123 = vector.shape_cast %122 : vector<1x8x384xf32> to vector<8x384xf32>
    %124 = arith.truncf %116 : vector<8x128xf32> to vector<8x128xbf16>
    %c0_45 = arith.constant 0 : index
    %c0_46 = arith.constant 0 : index
    %125 = vector.load %arg5[%c0_45, %c0_46] : memref<128x384xbf16, #tpu.memory_space<vmem>>, vector<128x384xbf16>
    %cst_47 = arith.constant dense<0.000000e+00> : vector<8x384xf32>
    %126 = tpu.matmul %124, %125, %cst_47 {dimension_numbers = #tpu.dot_dimension_numbers<[1], [0], [0], [1], [0, 0, 1, 1], [], []>} : vector<8x128xbf16>, vector<128x384xbf16>, vector<8x384xf32> -> vector<8x384xf32>
    %127 = vector.extract_strided_slice %123 {offsets = [0, 0], sizes = [8, 128], strides = [1, 1]} : vector<8x384xf32> to vector<8x128xf32>
    %128 = vector.extract_strided_slice %126 {offsets = [0, 0], sizes = [8, 128], strides = [1, 1]} : vector<8x384xf32> to vector<8x128xf32>
    %129 = arith.addf %127, %128 : vector<8x128xf32>
    %130 = arith.negf %129 : vector<8x128xf32>
    %131 = math.exp %130 : vector<8x128xf32>
    %cst_48 = arith.constant 1.000000e+00 : f32
    %132 = vector.broadcast %cst_48 : f32 to vector<8x128xf32>
    %133 = arith.addf %132, %131 : vector<8x128xf32>
    %134 = arith.divf %132, %133 : vector<8x128xf32>
    %135 = vector.extract_strided_slice %123 {offsets = [0, 128], sizes = [8, 128], strides = [1, 1]} : vector<8x384xf32> to vector<8x128xf32>
    %136 = vector.extract_strided_slice %126 {offsets = [0, 128], sizes = [8, 128], strides = [1, 1]} : vector<8x384xf32> to vector<8x128xf32>
    %137 = arith.addf %135, %136 : vector<8x128xf32>
    %138 = arith.negf %137 : vector<8x128xf32>
    %139 = math.exp %138 : vector<8x128xf32>
    %cst_49 = arith.constant 1.000000e+00 : f32
    %140 = vector.broadcast %cst_49 : f32 to vector<8x128xf32>
    %141 = arith.addf %140, %139 : vector<8x128xf32>
    %142 = arith.divf %140, %141 : vector<8x128xf32>
    %143 = vector.extract_strided_slice %123 {offsets = [0, 256], sizes = [8, 128], strides = [1, 1]} : vector<8x384xf32> to vector<8x128xf32>
    %144 = vector.extract_strided_slice %126 {offsets = [0, 256], sizes = [8, 128], strides = [1, 1]} : vector<8x384xf32> to vector<8x128xf32>
    %145 = arith.mulf %134, %144 : vector<8x128xf32>
    %146 = arith.addf %143, %145 : vector<8x128xf32>
    %147 = math.tanh %146 : vector<8x128xf32>
    %cst_50 = arith.constant 1.000000e+00 : f32
    %148 = vector.broadcast %cst_50 : f32 to vector<8x128xf32>
    %149 = arith.subf %148, %142 : vector<8x128xf32>
    %150 = arith.mulf %149, %147 : vector<8x128xf32>
    %151 = arith.mulf %142, %116 : vector<8x128xf32>
    %152 = arith.addf %150, %151 : vector<8x128xf32>
    %153 = arith.index_cast %c3_i32 : i32 to index
    %c0_51 = arith.constant 0 : index
    %c0_52 = arith.constant 0 : index
    %154 = vector.load %arg6[%153, %c0_51, %c0_52] : memref<4x8x128xf32, #tpu.memory_space<vmem>>, vector<1x8x128xf32>
    %155 = vector.shape_cast %154 : vector<1x8x128xf32> to vector<8x128xf32>
    %156 = vector.shape_cast %152 : vector<8x128xf32> to vector<1x8x128xf32>
    tpu.vector_store %arg6[%153, %c0_51, %c0_52], %156 {strides = array<i32>} : memref<4x8x128xf32, #tpu.memory_space<vmem>>, vector<1x8x128xf32>,
    %c4_i32 = arith.constant 4 : i32
    %c0_53 = arith.constant 0 : index
    %c0_54 = arith.constant 0 : index
    %157 = vector.load %arg7[%c0_53, %c0_54] : memref<8x128xf32, #tpu.memory_space<vmem>>, vector<8x128xf32>
    tpu.vector_store %arg7[%c0_53, %c0_54], %152 {strides = array<i32>} : memref<8x128xf32, #tpu.memory_space<vmem>>, vector<8x128xf32>,
    return
  }
  func.func @transform_0(%arg0: i32) -> (i32, i32, i32) {
    %c0_i32 = arith.constant 0 : i32
    %c0_i32_0 = arith.constant 0 : i32
    %c0_i32_1 = arith.constant 0 : i32
    return %arg0, %c0_i32, %c0_i32_0 : i32, i32, i32
  }
  func.func @transform_1(%arg0: i32) -> (i32, i32) {
    %c0_i32 = arith.constant 0 : i32
    %c0_i32_0 = arith.constant 0 : i32
    %c0_i32_1 = arith.constant 0 : i32
    return %c0_i32, %c0_i32_0 : i32, i32
  }
  func.func @transform_2(%arg0: i32) -> (i32, i32) {
    %c0_i32 = arith.constant 0 : i32
    %c0_i32_0 = arith.constant 0 : i32
    %c0_i32_1 = arith.constant 0 : i32
    return %c0_i32, %c0_i32_0 : i32, i32
  }
  func.func @transform_3(%arg0: i32) -> (i32, i32) {
    %c0_i32 = arith.constant 0 : i32
    %c0_i32_0 = arith.constant 0 : i32
    %c0_i32_1 = arith.constant 0 : i32
    return %c0_i32, %c0_i32_0 : i32, i32
  }
  func.func @transform_4(%arg0: i32) -> (i32, i32) {
    %c0_i32 = arith.constant 0 : i32
    %c0_i32_0 = arith.constant 0 : i32
    %c0_i32_1 = arith.constant 0 : i32
    return %c0_i32, %c0_i32_0 : i32, i32
  }
  func.func @transform_5(%arg0: i32) -> (i32, i32, i32) {
    %c0_i32 = arith.constant 0 : i32
    %c0_i32_0 = arith.constant 0 : i32
    %c0_i32_1 = arith.constant 0 : i32
    return %arg0, %c0_i32, %c0_i32_0 : i32, i32, i32
  }
}

</mosaic_0001>

<bundles_post_ra>
// kernel: tpu_custom_call.1
= control target key start
LH: loop header
LB: loop body
LE: loop exit
PB: predicated region body
PF: predicated region fallthrough
CT: control target
= control target key end

     0   :  { %10 = vsyncpa [#allocation5], 0  ;;  %s3001_s0 = inlined_call_operand.hbm [shape: bf16[8,8,128], index: 0, kind: input, shape index: {}]   ;;  %s3002_s1 = inlined_call_operand.hbm [shape: f32[8,128], index: 1, kind: input, shape index: {}]   ;;  %s3003_s2 = inlined_call_operand.hbm [shape: bf16[128,384], index: 2, kind: input, shape index: {}]   ;;  %s3004_s3 = inlined_call_operand.vmem [shape: f32[1,384], index: 3, kind: input, shape index: {}]   ;;  %s3005_s4 = inlined_call_operand.hbm [shape: bf16[128,384], index: 4, kind: input, shape index: {}]   ;;  %s3006_s5 = inlined_call_operand.hbm [shape: f32[8,8,128], index: 5, kind: output, shape index: {}]  }
   0x1   :  { %12 = vsyncpa [#allocation5 + $0x1], 0 }
   0x2   :  { %13 = vsyncpa [#allocation8], 0 }
   0x3   :  { %14 = vsyncpa [#allocation11], 0 }
   0x4   :  { %15 = vsyncpa [#allocation6], 0 }
   0x5   :  { %17 = vsyncpa [#allocation6 + $0x1], 0  ;;  %s2545_s18 = smov 0   ;;  %s2547_s19 = smov 0  }
   0x6   :  { %s2549_s20 = smov 0   ;;  %s2551_s21 = smov 0  }
   0x7 LB: > { %s2566_s22 = sadd.s32 4294967295, %s2499_s21   ;;  %s1793_s23 = sadd.s32 4294967294, %s2499_s21   ;;  %s2499_s21 = sphi %s2551_s21, %s3030_s21   ;;  %s2495_s20 = sphi %s2549_s20, %s3029_s20   ;;  %s2491_s19 = sphi %s2547_s19, %s3028_s19   ;;  %s2487_s18 = sphi %s2545_s18, %s3027_s18  }
   0x8   : > { %p43_p0 = scmp.ne.s32.totalorder %s2491_s19, %s2487_s18  ;;  %p3007_p1 = scmp.eq.s32.totalorder %s2566_s22, 0 }
   0x9   : > { %p157_p3 = scmp.eq.s32.totalorder %s1793_s23, 1  ;;  %p1794_p5 = scmp.ge.s32.totalorder %s2499_s21, 1 }
   0xa   : > { %p2575_p4 = por %p3007_p1, %p43_p0  ;;  %p164_p7 = scmp.lt.s32.totalorder %s2499_s21, 3 }
   0xb   : > { %p2580_p6 = por %p157_p3, %p43_p0  ;;  %s2501_s27 = smov [#allocation7]  }
   0xc   : > { %s3010_s24 = scalar_select %p2575_p4, 1, 0 }
   0xd   : > { %s3011_s25 = scalar_select %p2580_p6, 1, 0 }
   0xe   : > { %p2586_p9 = pnand %p1794_p5, %p164_p7  ;;  %s177_s28 = sshll.u32 %s2501_s27, 4  ;;  %s178_s28 = int_to_ptr.vmem [resolvable:$true] %s177_s28 }
   0xf   : > { %s2502_s29 = smov [#allocation9]   ;;  %s2503_s7 = smov [#allocation10]  }
  0x10   : > { %s3012_s26 = scalar_select %p2586_p9, 1, 0 }
  0x11   : > { %p2111_p11 = pneg %p2586_p9  ;;  %s187_s30 = sshll.u32 %s2502_s29, 4  ;;  %s2599_s30 = int_to_ptr.vmem [resolvable:$true] %s187_s30 }
  0x12   : > { %s2601_s8 = sshll.u32 %s2503_s7, 4  ;;  %s2311_s11 = scalar_lea.hbm %s3002_s1, 128  ;;  %s204_s8 = int_to_ptr.vmem [resolvable:$true] %s2601_s8 }
  0x13   : > { %p2595_p12 = pnand %p2111_p11, %p3007_p1  ;;  %p2312_p13 = scmp.ne.s32.totalorder %s3002_s1, %s2311_s11 }
  0x14   : > { %p2318_p7 = scmp.lt.u32.totalorder %s2311_s11, %s3002_s1 }
  0x15   : > { %p2611_p0 = pneg %p2595_p12 }
  0x17   : > { %p2314_p3 = pnand %p2611_p0, %p2312_p13 }
  0x19   : > { %p2315_p5 = pneg %p2314_p3 }
  0x1b   : > { %p2320_p11 = pnand %p2318_p7, %p2315_p5 }
  0x1d   : > { %2323 = shalt.err (!%p2320_p11)
}
  0x1e   : > { %s2324_s17 = scalar_lea.vmem %s178_s28, 128  ;;  %p2332_p2 = scmp.lt.s32.totalorder %s178_s28, %s178_s28 }
  0x1f   : > { %p2325_p10 = scmp.ne.s32.totalorder %s178_s28, %s2324_s17  ;;  %p2333_p6 = scmp.lt.s32.totalorder %s2324_s17, %s2324_s17 }
  0x21   : > { %p2327_p8 = pnand %p2325_p10, %p2611_p0  ;;  %p2334_p4 = por %p2333_p6, %p2332_p2 }
  0x23   : > { %p2328_p1 = pneg %p2327_p8 }
  0x25   : > { %p2335_p9 = pnand %p2334_p4, %p2328_p1 }
  0x27   : > { %2338 = shalt.err (!%p2335_p9)
}
  0x28   : > { %2114 = dma.hbm_to_vmem [thread:$0]  (!%p2595_p12), %s3002_s1, 128, %s178_s28, [#allocation8]  }
  0x29   : > { %s2339_s9 = scalar_lea.hbm %s3003_s2, 3072 }
  0x2a   : > { %p2340_p8 = scmp.ne.s32.totalorder %s3003_s2, %s2339_s9  ;;  %p2346_p1 = scmp.lt.u32.totalorder %s2339_s9, %s3003_s2 }
  0x2c   : > { %p2342_p10 = pnand %p2340_p8, %p2611_p0 }
  0x2e   : > { %p2343_p2 = pneg %p2342_p10 }
  0x30   : > { %p2348_p4 = pnand %p2346_p1, %p2343_p2 }
  0x32   : > { %2351 = shalt.err (!%p2348_p4)
}
  0x33   : > { %s2352_s28 = scalar_lea.vmem %s2599_s30, 3072  ;;  %p2360_p3 = scmp.lt.s32.totalorder %s2599_s30, %s2599_s30 }
  0x34   : > { %p2353_p6 = scmp.ne.s32.totalorder %s2599_s30, %s2352_s28  ;;  %p2361_p5 = scmp.lt.s32.totalorder %s2352_s28, %s2352_s28 }
  0x36   : > { %p2355_p9 = pnand %p2353_p6, %p2611_p0  ;;  %p2362_p7 = por %p2361_p5, %p2360_p3 }
  0x38   : > { %p2356_p13 = pneg %p2355_p9 }
  0x3a   : > { %p2363_p11 = pnand %p2362_p7, %p2356_p13 }
  0x3c   : > { %2366 = shalt.err (!%p2363_p11)
}
  0x3d   : > { %s2504_s15 = smov 192   ;;  %s2505_s16 = smov 12  }
  0x3e   : > { %2117 = dma.hbm_to_vmem [thread:$0]  (!%p2595_p12), %s3003_s2, 3072, %s2599_s30, [#allocation8], %s2504_s15, %s2504_s15, %s2505_s16  }
  0x3f   : > { %s2367_s7 = scalar_lea.hbm %s3005_s4, 3072 }
  0x40   : > { %p2368_p8 = scmp.ne.s32.totalorder %s3005_s4, %s2367_s7  ;;  %p2374_p1 = scmp.lt.u32.totalorder %s2367_s7, %s3005_s4 }
  0x42   : > { %p2370_p10 = pnand %p2368_p8, %p2611_p0 }
  0x44   : > { %p2371_p2 = pneg %p2370_p10 }
  0x46   : > { %p2376_p4 = pnand %p2374_p1, %p2371_p2 }
  0x48   : > { %2379 = shalt.err (!%p2376_p4)
}
  0x49   : > { %s2380_s13 = scalar_lea.vmem %s204_s8, 3072  ;;  %p2388_p3 = scmp.lt.s32.totalorder %s204_s8, %s204_s8 }
  0x4a   : > { %p2381_p6 = scmp.ne.s32.totalorder %s204_s8, %s2380_s13  ;;  %p2389_p5 = scmp.lt.s32.totalorder %s2380_s13, %s2380_s13 }
  0x4c   : > { %p2383_p9 = pnand %p2381_p6, %p2611_p0  ;;  %p2390_p7 = por %p2389_p5, %p2388_p3 }
  0x4e   : > { %p2384_p13 = pneg %p2383_p9 }
  0x50   : > { %p2391_p11 = pnand %p2390_p7, %p2384_p13 }
  0x52   : > { %2394 = shalt.err (!%p2391_p11)
}
  0x53   : > { %2120 = dma.hbm_to_vmem [thread:$0]  (!%p2595_p12), %s3005_s4, 3072, %s204_s8, [#allocation11], %s2504_s15, %s2504_s15, %s2505_s16  }
  0x54   : > { %s2670_s14 = sadd.s32 1, %s2499_s21   ;;  %s30_s6 = sadd.s32 1, %s2495_s20 }
  0x55   : > { %s27_s17 = ssub.s32 %s2499_s21, %s2670_s14  ;;  %p37_p8 = scmp.ne.s32.totalorder %s2495_s20, %s2491_s19 }
  0x56   : > { %p28_p0 = scmp.eq.s32.totalorder %s27_s17, 0  ;;  %p38_p10 = scmp.eq.s32.totalorder %s2499_s21, 0 }
  0x57   : > { %p2132_p2 = scmp.lt.s32.totalorder %s2499_s21, 2  ;;  %p3015_p4 = scmp.eq.s32.totalorder %s2566_s22, 1 }
  0x58   : > { %s2680_s23 = scalar_select %p28_p0, %s2495_s20, %s30_s6  }
  0x59   : > { %p39_p1 = por %p38_p10, %p37_p8  ;;  %p2684_p6 = por %p3015_p4, %p37_p8 }
  0x5a   : > { %s217_s29 = sand.u32 1, %s2495_s20   ;;  %s1947_s7 = sshll.u32 %s2499_s21, 8 }
  0x5b   : > { %s1799_s8 = sshll.u32 %s217_s29, 4  ;;  %s2693_s9 = scalar_lea.hbm %s3001_s0, %s1947_s7 }
  0x5c   : > { %s221_s10 = scalar_lea.vmem [#allocation4], %s1799_s8  ;;  %p2695_p12 = pnand %p2132_p2, %p39_p1 }
  0x5d   : > { %s228_s11 = sshll.u32 %s221_s10, 4  ;;  %s2701_s13 = scalar_lea.sflag [#allocation5], %s217_s29  ;;  %s2699_s11 = int_to_ptr.vmem [resolvable:$true] %s228_s11 }
  0x5e   : > { %s2395_s30 = scalar_lea.hbm %s2693_s9, 256  ;;  %p2397_p13 = pneg %p2695_p12 }
  0x5f   : > { %p2396_p9 = scmp.ne.s32.totalorder %s2693_s9, %s2395_s30  ;;  %s2400_s6 = scalar_lea.hbm %s3001_s0, 512 }
  0x60   : > { %p2401_p7 = scmp.lt.u32.totalorder %s2693_s9, %s3001_s0  ;;  %p2402_p11 = scmp.lt.u32.totalorder %s2400_s6, %s2395_s30 }
  0x61   : > { %p2398_p3 = pnand %p2397_p13, %p2396_p9  ;;  %p2404_p8 = scmp.lt.u32.totalorder %s2395_s30, %s2693_s9 }
  0x62   : > { %p2403_p0 = por %p2402_p11, %p2401_p7 }
  0x63   : > { %p2399_p5 = pneg %p2398_p3 }
  0x64   : > { %p2405_p10 = por %p2404_p8, %p2403_p0 }
  0x66   : > { %p2406_p2 = pnand %p2405_p10, %p2399_p5 }
  0x68   : > { %2409 = shalt.err (!%p2406_p2)
}
  0x69   : > { %s2410_s29 = scalar_lea.vmem %s2699_s11, 256  ;;  %s2506_s15 = smov [#allocation4]  }
  0x6a   : > { %p2411_p1 = scmp.ne.s32.totalorder %s2699_s11, %s2410_s29  ;;  %s2415_s16 = sshll.u32 %s2506_s15, 4  ;;  %s2416_s16 = int_to_ptr.vmem [resolvable:$false] %s2415_s16 }
  0x6b   : > { %s2417_s10 = scalar_lea.vmem %s2416_s16, 512  ;;  %p2418_p3 = scmp.lt.s32.totalorder %s2699_s11, %s2416_s16 }
  0x6c   : > { %p2413_p4 = pnand %p2411_p1, %p2397_p13  ;;  %p2419_p7 = scmp.lt.s32.totalorder %s2417_s10, %s2410_s29 }
  0x6e   : > { %p2414_p9 = pneg %p2413_p4  ;;  %p2420_p11 = por %p2419_p7, %p2418_p3 }
  0x70   : > { %p2421_p0 = pnand %p2420_p11, %p2414_p9 }
  0x72   : > { %2424 = shalt.err (!%p2421_p0)
}
  0x73   : > { %s2507_s30 = smov 64   ;;  %s2508_s28 = smov 4  }
  0x74   : > { %2124 = dma.hbm_to_vmem [thread:$0]  (!%p2695_p12), %s2693_s9, 256, %s2699_s11, %s2701_s13, %s2507_s30, %s2507_s30, %s2508_s28  }
  0x75   : > { %p3018_p13 = scmp.ne.s32.totalorder %s3012_s26, 0 }
  0x76   : > { %s2732_s17 = sand.u32 (!%p3018_p13), 1, %s2491_s19   ;;  %p3019_p5 = scmp.ne.s32.totalorder (!%p3018_p13), %s3010_s24, 0 }
  0x77   : > { %240 = sbr.rel (%p3018_p13) target bundleno = 1265 (0x4f1), region = 40  ;;  %s1803_s6 = sshll.u32 (!%p3018_p13), %s2732_s17, 4 }
  0x78   : > { %s243_s7 = scalar_lea.sflag (!%p3018_p13), [#allocation5], %s2732_s17  ;;  %s2736_s8 = scalar_lea.vmem (!%p3018_p13), [#allocation4], %s1803_s6 }
  0x7e   : > { %2470 = dma.done.wait (%p3019_p5), %s243_s7, 256  }
  0x7f   : > { %2472 = vsyncadd (%p3019_p5), %s243_s7, 4294967040  ;;  %p3020_p12 = scmp.eq.s32.totalorder %s2566_s22, 0 }
  0x81   : > { %2474 = dma.done.wait (%p3020_p12), [#allocation8], 3200   ;;  %p3021_p8 = pmov %p3020_p12 }
  0x83   : > { %2476 = vsyncadd (%p3021_p8), [#allocation8], 4294964096  ;;  %p3022_p10 = pmov %p3021_p8 }
  0x84   : > { %p3023_p2 = pmov %p3021_p8 }
  0x85   : > { %2478 = dma.done.wait (%p3022_p10), [#allocation11], 3072  }
  0x86   : > { %2480 = vsyncadd (%p3023_p2), [#allocation11], 4294964224  ;;  %s1807_s26 = sshll.u32 %s2732_s17, 5  ;;  %p3024_p1 = scmp.ne.s32.totalorder %s2566_s22, 0 }
  0x87   : > { %s2751_s9 = scalar_lea.vmem [#allocation12], %s1807_s26  ;;  %v292_v0 = vld [vmem:[#allocation7] sm:$0xff] (!%p3024_p1) }
  0x88   : > { %291 = sbr.rel (%p3024_p1) target bundleno = 143 (0x8f), region = 60  ;;  %293 = vst [vmem:[#allocation2] sm:$0xff] (!%p3024_p1), %v292_v0 }
  0x8f PF: > { %v2181_v1 = vld [vmem:[#allocation9 + $0x4] ss:$12 sps:$4 sm:$0xff]   ;;  %v2183_v2 = vld [vmem:[#allocation9] ss:$12 sps:$4 sm:$0xff]   ;;  %v2509_v3 = vmov 0   ;;  %v2510_v38 = vmov 0.0   ;;  %v332_v63 = vlaneseq }
  0x90   : > { %519 = vmatprep.mubr.bf16.mxu0 %v2509_v3  ;;  %487 = vmatprep.subr.bf16.mxu0 %v2181_v1  ;;  %v2184_v4 = vld [vmem:[#allocation9 + $0x1c] ss:$12 sps:$4 sm:$0xff]   ;;  %v2186_v5 = vld [vmem:[#allocation9 + $0x18] ss:$12 sps:$4 sm:$0xff]   ;;  %v2187_v6 = vld [vmem:[#allocation9 + $0x34] ss:$12 sps:$4 sm:$0xff]  }
  0x91   : > { %488 = vmatpush1.bf16.msra.mxu0 %v2183_v2  ;;  %v2189_v7 = vld [vmem:[#allocation9 + $0x30] ss:$12 sps:$4 sm:$0xff]   ;;  %v2190_v8 = vld [vmem:[#allocation9 + $0x4c] ss:$12 sps:$4 sm:$0xff]   ;;  %v2202_v9 = vld [vmem:[#allocation9 + $0x8] ss:$12 sps:$4 sm:$0xff]  }
  0x92   : > { %489 = vmatprep.subr.bf16.mxu0 %v2184_v4  ;;  %v2192_v10 = vld [vmem:[#allocation9 + $0x48] ss:$12 sps:$4 sm:$0xff]   ;;  %v2193_v11 = vld [vmem:[#allocation9 + $0x64] ss:$12 sps:$4 sm:$0xff]   ;;  %1995 = vmatprep.subr.bf16.mxu1 %v2202_v9  ;;  %v2206_v12 = vld [vmem:[#allocation9 + $0x20] ss:$12 sps:$4 sm:$0xff]  }
  0x93   : > { %1996 = vmatpush3.bf16.msra.mxu1 %v2202_v9  ;;  %v2207_v13 = vld [vmem:[%s2736_s8] sm:$0xff]   ;;  %v2199_v19 = vld [vmem:[#allocation9 + $0x94] ss:$12 sps:$4 sm:$0xff]   ;;  %v2757_v25 = vld [vmem:[#allocation10 + $0x4] ss:$12 sps:$4 sm:$0xff]   ;;  %vm2511_vm0 = vmmov 0  }
  0x94   : > { %v2195_v14 = vld [vmem:[#allocation9 + $0x60] ss:$12 sps:$4 sm:$0xff]   ;;  %1997 = vmatprep.subr.bf16.mxu1 %v2206_v12  ;;  %v2211_v15 = vld [vmem:[#allocation9 + $0x38] ss:$12 sps:$4 sm:$0xff]   ;;  %2011 = vmatprep.mubr.bf16.mxu1 %v2207_v13  ;;  %v2196_v16 = vld [vmem:[#allocation9 + $0x7c] ss:$12 sps:$4 sm:$0xff]  }
  0x95   : > { %490 = vmatpush1.bf16.msra.mxu0 %v2186_v5  ;;  %v2215_v17 = vld [vmem:[#allocation9 + $0x50] ss:$12 sps:$4 sm:$0xff]   ;;  %v2198_v18 = vld [vmem:[#allocation9 + $0x78] ss:$12 sps:$4 sm:$0xff]   ;;  %v2219_v20 = vld [vmem:[#allocation9 + $0x68] ss:$12 sps:$4 sm:$0xff]  }
  0x96   : > { %491 = vmatprep.subr.bf16.mxu0 %v2187_v6  ;;  %v2201_v21 = vld [vmem:[#allocation9 + $0x90] ss:$12 sps:$4 sm:$0xff]   ;;  %v2203_v22 = vld [vmem:[#allocation9 + $0xac] ss:$12 sps:$4 sm:$0xff]   ;;  %v2205_v24 = vld [vmem:[#allocation9 + $0xa8] ss:$12 sps:$4 sm:$0xff]  }
  0x97   : > { %1998 = vmatpush3.bf16.msra.mxu1 %v2206_v12  ;;  %v2223_v23 = vld [vmem:[#allocation9 + $0x80] ss:$12 sps:$4 sm:$0xff]   ;;  %v2227_v26 = vld [vmem:[#allocation9 + $0x98] ss:$12 sps:$4 sm:$0xff]   ;;  %v2762_v28 = vld [vmem:[#allocation10 + $0x1c] ss:$12 sps:$4 sm:$0xff]  }
  0x98   : > { %1999 = vmatprep.subr.bf16.mxu1 %v2211_v15  ;;  %v2759_v27 = vld [vmem:[#allocation10] ss:$12 sps:$4 sm:$0xff]   ;;  %v2232_v29 = vld [vmem:[#allocation9 + $0xb0] ss:$12 sps:$4 sm:$0xff]   ;;  %v2765_v30 = vld [vmem:[#allocation10 + $0x18] ss:$12 sps:$4 sm:$0xff]  }
  0x99   : > { %492 = vmatpush1.bf16.msra.mxu0 %v2189_v7  ;;  %v2769_v31 = vld [vmem:[#allocation10 + $0x34] ss:$12 sps:$4 sm:$0xff]   ;;  %v2771_v32 = vld [vmem:[#allocation10 + $0x30] ss:$12 sps:$4 sm:$0xff]   ;;  %v2775_v34 = vld [vmem:[#allocation10 + $0x4c] ss:$12 sps:$4 sm:$0xff]  }
  0x9a   : > { %493 = vmatprep.subr.bf16.mxu0 %v2190_v8  ;;  %v2231_v33 = vld [vmem:[%s2736_s8 + $0x8] sm:$0xff]   ;;  %v2790_v41 = vld [vmem:[#allocation10 + $0x7c] ss:$12 sps:$4 sm:$0xff]   ;;  %v2807_v47 = vld [vmem:[#allocation10 + $0xac] ss:$12 sps:$4 sm:$0xff]   ;;  %v333_v0 = vshrl.u32 %v332_v63, 7 }
  0x9b   : > { %2000 = vmatpush3.bf16.msra.mxu1 %v2211_v15  ;;  %v2236_v35 = vld [vmem:[#allocation10 + $0x8] ss:$12 sps:$4 sm:$0xff]   ;;  %v2780_v37 = vld [vmem:[#allocation10 + $0x64] ss:$12 sps:$4 sm:$0xff]   ;;  %v2240_v39 = vld [vmem:[#allocation10 + $0x20] ss:$12 sps:$4 sm:$0xff]  }
  0x9c   : > { %2001 = vmatprep.subr.bf16.mxu1 %v2215_v17  ;;  %v2778_v36 = vld [vmem:[#allocation10 + $0x48] ss:$12 sps:$4 sm:$0xff]   ;;  %v2786_v40 = vld [vmem:[#allocation10 + $0x60] ss:$12 sps:$4 sm:$0xff]   ;;  %v2241_v42 = vld [vmem:[#allocation10 + $0x38] ss:$12 sps:$4 sm:$0xff]  }
  0x9d   : > { %494 = vmatpush1.bf16.msra.mxu0 %v2192_v10  ;;  %v2795_v43 = vld [vmem:[#allocation10 + $0x78] ss:$12 sps:$4 sm:$0xff]   ;;  %v2797_v44 = vld [vmem:[#allocation10 + $0x94] ss:$12 sps:$4 sm:$0xff]   ;;  %v2242_v45 = vld [vmem:[#allocation10 + $0x50] ss:$12 sps:$4 sm:$0xff]  }
  0x9e   : > { %495 = vmatprep.subr.bf16.mxu0 %v2193_v11  ;;  %v2802_v46 = vld [vmem:[#allocation10 + $0x90] ss:$12 sps:$4 sm:$0xff]   ;;  %v2243_v48 = vld [vmem:[#allocation10 + $0x68] ss:$12 sps:$4 sm:$0xff]   ;;  %v2244_v51 = vld [vmem:[#allocation10 + $0x80] ss:$12 sps:$4 sm:$0xff]  }
  0x9f   : > { %2002 = vmatpush3.bf16.msra.mxu1 %v2215_v17  ;;  %v2811_v49 = vld [vmem:[#allocation10 + $0xa8] ss:$12 sps:$4 sm:$0xff]   ;;  %v2245_v53 = vld [vmem:[#allocation10 + $0x98] ss:$12 sps:$4 sm:$0xff]   ;;  %v2246_v54 = vld [vmem:[#allocation10 + $0xb0] ss:$12 sps:$4 sm:$0xff]  }
  0xa0   : > { %2003 = vmatprep.subr.bf16.mxu1 %v2219_v20  ;;  %v2813_v50 = vld [vmem:[#allocation2] sm:$0xff]  ;;  %v2248_v56 = vld [vmem:[#allocation10 + $0x20] ss:$12 sps:$4 sm:$0xff]   ;;  %v2249_v57 = vld [vmem:[#allocation10 + $0x38] ss:$12 sps:$4 sm:$0xff]   ;;  %v334_v1 = vsub.s32 0, %v333_v0 }
  0xa1   : > { %496 = vmatpush1.bf16.msra.mxu0 %v2195_v14  ;;  %v605_v52 = vpack.c.bf16 %v2813_v50, %v2813_v50  ;;  %v2247_v55 = vld [vmem:[#allocation10 + $0x8] ss:$12 sps:$4 sm:$0xff]   ;;  %v2250_v58 = vld [vmem:[#allocation10 + $0x50] ss:$12 sps:$4 sm:$0xff]   ;;  %v2252_v60 = vld [vmem:[#allocation10 + $0x80] ss:$12 sps:$4 sm:$0xff]  }
  0xa2   : > { %497 = vmatprep.subr.bf16.mxu0 %v2196_v16  ;;  %v2251_v59 = vld [vmem:[#allocation10 + $0x68] ss:$12 sps:$4 sm:$0xff]   ;;  %v2253_v61 = vld [vmem:[#allocation10 + $0x98] ss:$12 sps:$4 sm:$0xff]   ;;  %v2254_v62 = vld [vmem:[#allocation10 + $0xb0] ss:$12 sps:$4 sm:$0xff]  }
  0xa3   : > { %2004 = vmatpush3.bf16.msra.mxu1 %v2219_v20  ;;  %v330_v2 = vld [vmem:[%s3004_s3] sm:$0x7]  ;;  %v338_v4 = vsub.s32 1, %v333_v0  ;;  %v342_v12 = vsub.s32 2, %v333_v0  ;;  %s1948_s12 = sshll.u32 %s2566_s22, 9  ;;  %s1691_s13 = sshll.u32 %s2751_s9, 4  ;;  %s2956_s13 = int_to_ptr.vmem [resolvable:$true] %s1691_s13 }
  0xa4   : > { %2005 = vmatprep.subr.bf16.mxu1 %v2223_v23  ;;  %v335_v5 = vrot.slane %v330_v2, %v334_v1  ;;  %s2954_s16 = scalar_lea.hbm %s3006_s5, %s1948_s12  ;;  %s1678_s10 = scalar_lea.sflag [#allocation6], %s2732_s17 }
  0xa5   : > { %498 = vmatpush1.bf16.msra.mxu0 %v2198_v18  ;;  %v339_v8 = vrot.slane %v330_v2, %v338_v4  ;;  %v343_v14 = vrot.slane %v330_v2, %v342_v12  ;;  %s2425_s30 = scalar_lea.vmem %s2956_s13, 512  ;;  %s2512_s22 = smov [#allocation12]  }
  0xa6   : > { %499 = vmatprep.subr.bf16.mxu0 %v2199_v19  ;;  %p2426_p4 = scmp.ne.s32.totalorder %s2956_s13, %s2425_s30  ;;  %s2429_s28 = sshll.u32 %s2512_s22, 4  ;;  %s2430_s28 = int_to_ptr.vmem [resolvable:$false] %s2429_s28 }
  0xa7   : > { %2006 = vmatpush3.bf16.msra.mxu1 %v2223_v23  ;;  %s2431_s6 = scalar_lea.vmem %s2430_s28, 1024  ;;  %p2432_p7 = scmp.lt.s32.totalorder %s2956_s13, %s2430_s28 }
  0xa8   : > { %2007 = vmatprep.subr.bf16.mxu1 %v2227_v26  ;;  %p2427_p9 = pnand %p2426_p4, %p2684_p6  ;;  %p2433_p11 = scmp.lt.s32.totalorder %s2431_s6, %s2425_s30 }
  0xa9   : > { %500 = vmatpush1.bf16.msra.mxu0 %v2201_v21 }
  0xaa   : > { %501 = vmatprep.subr.bf16.mxu0 %v2203_v22  ;;  %p2428_p3 = pneg %p2427_p9  ;;  %p2434_p0 = por %p2433_p11, %p2432_p7 }
  0xab   : > { %2008 = vmatpush3.bf16.msra.mxu1 %v2227_v26 }
  0xac   : > { %2009 = vmatprep.subr.bf16.mxu1 %v2232_v29  ;;  %p2435_p13 = pnand %p2434_p0, %p2428_p3 }
  0xad   : > { %502 = vmatpush1.bf16.msra.mxu0 %v2205_v24 }
  0xae   : > { %766 = vmatprep.subr.bf16.mxu0 %v2757_v25 }
  0xaf   : > { %2010 = vmatpush3.bf16.msra.mxu1 %v2232_v29 }
  0xb0   : > { %520 = vmatmul.mubr.bf16.vlgmr.msra.gmra.mrb[0].mxu0 %v2207_v13  ;;  %2015 = vmatprep.subr.bf16.mxu1 %v2510_v38 }
  0xb1   : > { %767 = vmatpush1.bf16.msra.mxu0 %v2759_v27  ;;  %529 = vmatprep.mubr.bf16.mxu0 %v2509_v3 }
  0xb2   : > { %768 = vmatprep.subr.bf16.mxu0 %v2762_v28  ;;  %2012 = vmatmul.mubr.bf16.vlgmr.msra.gmra.mrb[0].mxu1 %v2231_v33 }
  0xb3   : > { %2016 = vmatpush3.bf16.msra.mxu1 %v2236_v35  ;;  %2031 = vmatprep.mubr.msk.bf16.mxu1 %vm2511_vm0, %v2510_v38 }
  0xb4   : > { %2017 = vmatprep.subr.bf16.mxu1 %v2510_v38 }
  0xb5   : > { %769 = vmatpush1.bf16.msra.mxu0 %v2765_v30 }
  0xb6   : > { %770 = vmatprep.subr.bf16.mxu0 %v2769_v31 }
  0xb7   : > { %2018 = vmatpush3.bf16.msra.mxu1 %v2240_v39 }
  0xb8   : > { %530 = vmatmul.mubr.bf16.gmra.mrb[4].mxu0 %v2231_v33  ;;  %2019 = vmatprep.subr.bf16.mxu1 %v2510_v38 }
  0xb9   : > { %771 = vmatpush1.bf16.msra.mxu0 %v2771_v32  ;;  %798 = vmatprep.mubr.bf16.mxu0 %v2509_v3 }
  0xba   : > { %772 = vmatprep.subr.bf16.mxu0 %v2775_v34 }
  0xbb   : > { %2020 = vmatpush3.bf16.msra.mxu1 %v2241_v42 }
  0xbc   : > { %2021 = vmatprep.subr.bf16.mxu1 %v2510_v38 }
  0xbd   : > { %773 = vmatpush1.bf16.msra.mxu0 %v2778_v36 }
  0xbe   : > { %774 = vmatprep.subr.bf16.mxu0 %v2780_v37 }
  0xbf   : > { %2022 = vmatpush3.bf16.msra.mxu1 %v2242_v45 }
  0xc0   : > { %2023 = vmatprep.subr.bf16.mxu1 %v2510_v38 }
  0xc1   : > { %775 = vmatpush1.bf16.msra.mxu0 %v2786_v40 }
  0xc2   : > { %776 = vmatprep.subr.bf16.mxu0 %v2790_v41 }
  0xc3   : > { %2024 = vmatpush3.bf16.msra.mxu1 %v2243_v48 }
  0xc4   : > { %2025 = vmatprep.subr.bf16.mxu1 %v2510_v38 }
  0xc5   : > { %777 = vmatpush1.bf16.msra.mxu0 %v2795_v43 }
  0xc6   : > { %778 = vmatprep.subr.bf16.mxu0 %v2797_v44 }
  0xc7   : > { %2026 = vmatpush3.bf16.msra.mxu1 %v2244_v51 }
  0xc8   : > { %2027 = vmatprep.subr.bf16.mxu1 %v2510_v38 }
  0xc9   : > { %779 = vmatpush1.bf16.msra.mxu0 %v2802_v46 }
  0xca   : > { %780 = vmatprep.subr.bf16.mxu0 %v2807_v47 }
  0xcb   : > { %2028 = vmatpush3.bf16.msra.mxu1 %v2245_v53 }
  0xcc   : > { %2029 = vmatprep.subr.bf16.mxu1 %v2510_v38 }
  0xcd   : > { %781 = vmatpush1.bf16.msra.mxu0 %v2811_v49 }
  0xce   : > { %1034 = vmatprep.subr.bf16.mxu0 %v2757_v25 }
  0xcf   : > { %2030 = vmatpush3.bf16.msra.mxu1 %v2246_v54 }
  0xd0   : > { %799 = vmatmul.mubr.bf16.vlgmr.msra.gmra.mrb[8].mxu0 %v605_v52  ;;  %2035 = vmatprep.subr.bf16.mxu1 %v2510_v38 }
  0xd1   : > { %1035 = vmatpush1.bf16.msra.mxu0 %v2759_v27  ;;  %1066 = vmatprep.mubr.bf16.mxu0 %v2509_v3 }
  0xd2   : > { %1036 = vmatprep.subr.bf16.mxu0 %v2762_v28  ;;  %2032 = vmatmul.mubr.bf16.vlgmr.msra.gmra.mrb[4].mxu1 %v605_v52 }
  0xd3   : > { %2051 = vmatprep.mubr.msk.bf16.mxu1 %vm2511_vm0, %v2510_v38  ;;  %2036 = vmatpush3.bf16.msra.mxu1 %v2247_v55 }
  0xd4   : > { %2037 = vmatprep.subr.bf16.mxu1 %v2510_v38 }
  0xd5   : > { %1037 = vmatpush1.bf16.msra.mxu0 %v2765_v30 }
  0xd6   : > { %1038 = vmatprep.subr.bf16.mxu0 %v2769_v31 }
  0xd7   : > { %2038 = vmatpush3.bf16.msra.mxu1 %v2248_v56 }
  0xd8   : > { %2039 = vmatprep.subr.bf16.mxu1 %v2510_v38 }
  0xd9   : > { %1039 = vmatpush1.bf16.msra.mxu0 %v2771_v32 }
  0xda   : > { %1040 = vmatprep.subr.bf16.mxu0 %v2775_v34 }
  0xdb   : > { %2040 = vmatpush3.bf16.msra.mxu1 %v2249_v57 }
  0xdc   : > { %2041 = vmatprep.subr.bf16.mxu1 %v2510_v38 }
  0xdd   : > { %1041 = vmatpush1.bf16.msra.mxu0 %v2778_v36 }
  0xde   : > { %1042 = vmatprep.subr.bf16.mxu0 %v2780_v37 }
  0xdf   : > { %2042 = vmatpush3.bf16.msra.mxu1 %v2250_v58 }
  0xe0   : > { %2043 = vmatprep.subr.bf16.mxu1 %v2510_v38 }
  0xe1   : > { %1043 = vmatpush1.bf16.msra.mxu0 %v2786_v40 }
  0xe2   : > { %1044 = vmatprep.subr.bf16.mxu0 %v2790_v41 }
  0xe3   : > { %2044 = vmatpush3.bf16.msra.mxu1 %v2251_v59 }
  0xe4   : > { %2045 = vmatprep.subr.bf16.mxu1 %v2510_v38 }
  0xe5   : > { %1045 = vmatpush1.bf16.msra.mxu0 %v2795_v43 }
  0xe6   : > { %1046 = vmatprep.subr.bf16.mxu0 %v2797_v44 }
  0xe7   : > { %2046 = vmatpush3.bf16.msra.mxu1 %v2252_v60 }
  0xe8   : > { %2047 = vmatprep.subr.bf16.mxu1 %v2510_v38 }
  0xe9   : > { %1047 = vmatpush1.bf16.msra.mxu0 %v2802_v46 }
  0xea   : > { %1048 = vmatprep.subr.bf16.mxu0 %v2807_v47 }
  0xeb   : > { %2048 = vmatpush3.bf16.msra.mxu1 %v2253_v61 }
  0xec   : > { %2049 = vmatprep.subr.bf16.mxu1 %v2510_v38 }
  0xed   : > { %1049 = vmatpush1.bf16.msra.mxu0 %v2811_v49 }
  0xee   : > { %1303 = vmatprep.subr.bf16.mxu0 %v2757_v25 }
  0xef   : > { %2050 = vmatpush3.bf16.msra.mxu1 %v2254_v62 }
  0xf0   : > { %2055 = vmatprep.subr.bf16.mxu1 %v2510_v38 }
 0x183   : > { %v521_v6 = vpop.f32.mrb[0].mxu0 }
 0x184   : > { %v523_v7 = vpop.f32.mrb[1].mxu0  ;;  %v522_v42 = vadd.f32 %v521_v6, %v335_v5 }
 0x185   : > { %v525_v9 = vpop.f32.mrb[2].mxu0  ;;  %v2013_v20 = vpop.f32.mrb[0].mxu1  ;;  %v524_v45 = vadd.f32 %v523_v7, %v339_v8 }
 0x186   : > { %v2854_v10 = vadd.f32 %v525_v9, %v335_v5  ;;  %v527_v11 = vpop.f32.mrb[3].mxu0  ;;  %v2864_v23 = vadd.f32 %v2013_v20, %v343_v14  ;;  %v574_v24 = vpop.f32.mrb[1].mxu1  ;;  %v2258_v20 = vld [vmem:[#allocation10 + $0x50] ss:$12 sps:$4 sm:$0xff]  }
 0x187   : > { %v2856_v13 = vadd.f32 %v527_v11, %v339_v8  ;;  %v2014_v29 = vpop.f32.mrb[2].mxu1  ;;  %v575_v4 = vadd.f32 %v574_v24, %v343_v14  ;;  %v2260_v24 = vld [vmem:[#allocation10 + $0x80] ss:$12 sps:$4 sm:$0xff]  }
 0x188   : > { %v2868_v33 = vadd.f32 %v2014_v29, %v343_v14  ;;  %v577_v35 = vpop.f32.mrb[3].mxu1  ;;  %v2262_v29 = vld [vmem:[#allocation10 + $0xb0] ss:$12 sps:$4 sm:$0xff]  }
 0x189   : > { %v2870_v39 = vadd.f32 %v577_v35, %v343_v14  ;;  %v2256_v14 = vld [vmem:[#allocation10 + $0x20] ss:$12 sps:$4 sm:$0xff]  }
 0x18b   : > { %v531_v15 = vpop.f32.mrb[4].mxu0 }
 0x18c   : > { %v2858_v16 = vadd.f32 %v531_v15, %v335_v5  ;;  %v533_v17 = vpop.f32.mrb[5].mxu0 }
 0x18d   : > { %v2860_v18 = vadd.f32 %v533_v17, %v339_v8  ;;  %v535_v19 = vpop.f32.mrb[6].mxu0 }
 0x18e   : > { %v2862_v21 = vadd.f32 %v535_v19, %v335_v5  ;;  %v537_v22 = vpop.f32.mrb[7].mxu0  ;;  %v2257_v19 = vld [vmem:[#allocation10 + $0x38] ss:$12 sps:$4 sm:$0xff]  }
 0x18f   : > { %v2866_v26 = vadd.f32 %v537_v22, %v339_v8  ;;  %v2259_v22 = vld [vmem:[#allocation10 + $0x68] ss:$12 sps:$4 sm:$0xff]  }
 0x1a3   : > { %v800_v48 = vpop.f32.mrb[8].mxu0 }
 0x1a4   : > { %v847_v51 = vadd.f32 %v800_v48, %v522_v42  ;;  %v802_v52 = vpop.f32.mrb[9].mxu0 }
 0x1a5   : > { %v854_v53 = vadd.f32 %v802_v52, %v524_v45  ;;  %v804_v54 = vpop.f32.mrb[10].mxu0  ;;  %v841_v58 = vpop.f32.mrb[4].mxu1 }
 0x1a6   : > { %v1859_v55 = vmul.f32 -1.442695, %v847_v51  ;;  %v805_v56 = vpop.f32.mrb[11].mxu0  ;;  %v2033_v59 = vpop.f32.mrb[5].mxu1 }
 0x1a7   : > { %v1860_v57 = vmul.f32 -1.442695, %v854_v53  ;;  %v844_v60 = vpop.f32.mrb[6].mxu1 }
 0x1a8   : > { %2271 = vpow2.f32 %v1859_v55  ;;  %v2034_v61 = vpop.f32.mrb[7].mxu1 }
 0x1a9   : > { %2273 = vpow2.f32 %v1860_v57 }
 0x1b2   : > { %v2272_v62 = vpop.eup %2271 }
 0x1b3   : > { %v851_v63 = vadd.f32 1.0, %v2272_v62  ;;  %v2274_v0 = vpop.eup %2273 }
 0x1b4   : > { %v858_v1 = vadd.f32 1.0, %v2274_v0 }
 0x1b5   : > { %2275 = vrcp.f32 %v851_v63 }
 0x1b6   : > { %2277 = vrcp.f32 %v858_v1 }
 0x1bf   : > { %v2276_v2 = vpop.eup %2275 }
 0x1c0   : > { %v861_v5 = vmul.f32 %v2276_v2, %v841_v58  ;;  %v2278_v7 = vpop.eup %2277 }
 0x1c1   : > { %v864_v8 = vsub.f32 1.0, %v2278_v7  ;;  %v866_v12 = vmul.f32 %v2278_v7, %v2813_v50  ;;  %v2255_v50 = vld [vmem:[#allocation10 + $0x8] ss:$12 sps:$4 sm:$0xff]  }
 0x1c2   : > { %v862_v6 = vadd.f32 %v861_v5, %v575_v4 }
 0x1c4   : > { %2279 = vtanh.f32 %v862_v6 }
 0x1ce   : > { %v2280_v9 = vpop.eup %2279 }
 0x1cf   : > { %v865_v11 = vmul.f32 %v2280_v9, %v864_v8 }
 0x1d1   : > { %v2873_v15 = vadd.f32 %v866_v12, %v865_v11 }
 0x1d3   : > { %868 = vst [vmem:[%s2751_s9] sm:$0xff] %v2873_v15  ;;  %v873_v17 = vpack.c.bf16 %v2873_v15, %v2873_v15 }
 0x1d5   : > { %1067 = vmatmul.mubr.bf16.vlgmr.msra.gmra.mrb[12].mxu0 %v873_v17  ;;  %2052 = vmatmul.mubr.bf16.vlgmr.msra.gmra.mrb[8].mxu1 %v873_v17 }
 0x1d6   : > { %1304 = vmatpush1.bf16.msra.mxu0 %v2759_v27  ;;  %1335 = vmatprep.mubr.bf16.mxu0 %v2509_v3 }
 0x1d7   : > { %1305 = vmatprep.subr.bf16.mxu0 %v2762_v28  ;;  %2071 = vmatprep.mubr.msk.bf16.mxu1 %vm2511_vm0, %v2510_v38 }
 0x1d8   : > { %2056 = vmatpush3.bf16.msra.mxu1 %v2255_v50 }
 0x1d9   : > { %2057 = vmatprep.subr.bf16.mxu1 %v2510_v38 }
 0x1da   : > { %1306 = vmatpush1.bf16.msra.mxu0 %v2765_v30 }
 0x1db   : > { %1307 = vmatprep.subr.bf16.mxu0 %v2769_v31 }
 0x1dc   : > { %2058 = vmatpush3.bf16.msra.mxu1 %v2256_v14 }
 0x1dd   : > { %2059 = vmatprep.subr.bf16.mxu1 %v2510_v38 }
 0x1de   : > { %1308 = vmatpush1.bf16.msra.mxu0 %v2771_v32 }
 0x1df   : > { %1309 = vmatprep.subr.bf16.mxu0 %v2775_v34 }
 0x1e0   : > { %2060 = vmatpush3.bf16.msra.mxu1 %v2257_v19 }
 0x1e1   : > { %2061 = vmatprep.subr.bf16.mxu1 %v2510_v38 }
 0x1e2   : > { %1310 = vmatpush1.bf16.msra.mxu0 %v2778_v36 }
 0x1e3   : > { %1311 = vmatprep.subr.bf16.mxu0 %v2780_v37 }
 0x1e4   : > { %2062 = vmatpush3.bf16.msra.mxu1 %v2258_v20 }
 0x1e5   : > { %2063 = vmatprep.subr.bf16.mxu1 %v2510_v38 }
 0x1e6   : > { %1312 = vmatpush1.bf16.msra.mxu0 %v2786_v40 }
 0x1e7   : > { %1313 = vmatprep.subr.bf16.mxu0 %v2790_v41 }
 0x1e8   : > { %2064 = vmatpush3.bf16.msra.mxu1 %v2259_v22 }
 0x1e9   : > { %2065 = vmatprep.subr.bf16.mxu1 %v2510_v38 }
 0x1ea   : > { %1314 = vmatpush1.bf16.msra.mxu0 %v2795_v43 }
 0x1eb   : > { %1315 = vmatprep.subr.bf16.mxu0 %v2797_v44 }
 0x1ec   : > { %2066 = vmatpush3.bf16.msra.mxu1 %v2260_v24 }
 0x1ed   : > { %2067 = vmatprep.subr.bf16.mxu1 %v2510_v38 }
 0x1ee   : > { %1316 = vmatpush1.bf16.msra.mxu0 %v2802_v46 }
 0x1ef   : > { %1317 = vmatprep.subr.bf16.mxu0 %v2807_v47 }
 0x1f2   : > { %1318 = vmatpush1.bf16.msra.mxu0 %v2811_v49 }
 0x1f3   : > { %1572 = vmatprep.subr.bf16.mxu0 %v2757_v25  ;;  %v2261_v25 = vld [vmem:[#allocation10 + $0x98] ss:$12 sps:$4 sm:$0xff]  }
 0x1f4   : > { %2068 = vmatpush3.bf16.msra.mxu1 %v2261_v25 }
 0x1f5   : > { %2069 = vmatprep.subr.bf16.mxu1 %v2510_v38 }
 0x1f8   : > { %2070 = vmatpush3.bf16.msra.mxu1 %v2262_v29 }
 0x1f9   : > { %2075 = vmatprep.subr.bf16.mxu1 %v2510_v38 }
 0x2a8   : > { %v1068_v35 = vpop.f32.mrb[12].mxu0  ;;  %v1109_v42 = vpop.f32.mrb[8].mxu1 }
 0x2a9   : > { %v1115_v45 = vadd.f32 %v1068_v35, %v2854_v10  ;;  %v1070_v48 = vpop.f32.mrb[13].mxu0  ;;  %v2053_v51 = vpop.f32.mrb[9].mxu1 }
 0x2aa   : > { %v1122_v52 = vadd.f32 %v1070_v48, %v2856_v13  ;;  %v1072_v53 = vpop.f32.mrb[14].mxu0  ;;  %v1112_v54 = vpop.f32.mrb[10].mxu1 }
 0x2ab   : > { %v1885_v55 = vmul.f32 -1.442695, %v1115_v45  ;;  %v1073_v56 = vpop.f32.mrb[15].mxu0  ;;  %v2054_v57 = vpop.f32.mrb[11].mxu1 }
 0x2ac   : > { %v1886_v58 = vmul.f32 -1.442695, %v1122_v52 }
 0x2ad   : > { %2281 = vpow2.f32 %v1885_v55 }
 0x2ae   : > { %2283 = vpow2.f32 %v1886_v58 }
 0x2b7   : > { %v2282_v59 = vpop.eup %2281 }
 0x2b8   : > { %v1119_v60 = vadd.f32 1.0, %v2282_v59  ;;  %v2284_v61 = vpop.eup %2283 }
 0x2b9   : > { %v1126_v62 = vadd.f32 1.0, %v2284_v61 }
 0x2ba   : > { %2285 = vrcp.f32 %v1119_v60 }
 0x2bb   : > { %2287 = vrcp.f32 %v1126_v62 }
 0x2c4   : > { %v2286_v63 = vpop.eup %2285 }
 0x2c5   : > { %v1129_v10 = vmul.f32 %v2286_v63, %v1109_v42  ;;  %v2288_v13 = vpop.eup %2287 }
 0x2c6   : > { %v1132_v1 = vsub.f32 1.0, %v2288_v13  ;;  %v1134_v5 = vmul.f32 %v2288_v13, %v2873_v15 }
 0x2c7   : > { %v1130_v0 = vadd.f32 %v1129_v10, %v2870_v39 }
 0x2c9   : > { %2289 = vtanh.f32 %v1130_v0 }
 0x2d3   : > { %v2290_v2 = vpop.eup %2289 }
 0x2d4   : > { %v1133_v4 = vmul.f32 %v2290_v2, %v1132_v1 }
 0x2d6   : > { %v2910_v6 = vadd.f32 %v1134_v5, %v1133_v4 }
 0x2d8   : > { %1887 = vst [vmem:[%s2751_s9 + $0x8] sm:$0xff] %v2910_v6  ;;  %v1142_v7 = vpack.c.bf16 %v2910_v6, %v2910_v6 }
 0x2da   : > { %1336 = vmatmul.mubr.bf16.vlgmr.msra.gmra.mrb[16].mxu0 %v1142_v7  ;;  %2072 = vmatmul.mubr.bf16.vlgmr.msra.gmra.mrb[12].mxu1 %v1142_v7 }
 0x2db   : > { %1573 = vmatpush1.bf16.msra.mxu0 %v2759_v27  ;;  %1604 = vmatprep.mubr.bf16.mxu0 %v2509_v3  ;;  %v2263_v3 = vld [vmem:[#allocation10 + $0x8] ss:$12 sps:$4 sm:$0xff]   ;;  %v2264_v27 = vld [vmem:[#allocation10 + $0x20] ss:$12 sps:$4 sm:$0xff]  }
 0x2dc   : > { %1574 = vmatprep.subr.bf16.mxu0 %v2762_v28  ;;  %2091 = vmatprep.mubr.msk.bf16.mxu1 %vm2511_vm0, %v2510_v38  ;;  %v2265_v28 = vld [vmem:[#allocation10 + $0x38] ss:$12 sps:$4 sm:$0xff]  }
 0x2dd   : > { %2076 = vmatpush3.bf16.msra.mxu1 %v2263_v3 }
 0x2de   : > { %2077 = vmatprep.subr.bf16.mxu1 %v2510_v38 }
 0x2df   : > { %1575 = vmatpush1.bf16.msra.mxu0 %v2765_v30  ;;  %v2266_v30 = vld [vmem:[#allocation10 + $0x50] ss:$12 sps:$4 sm:$0xff]  }
 0x2e0   : > { %1576 = vmatprep.subr.bf16.mxu0 %v2769_v31  ;;  %v2267_v31 = vld [vmem:[#allocation10 + $0x68] ss:$12 sps:$4 sm:$0xff]  }
 0x2e1   : > { %2078 = vmatpush3.bf16.msra.mxu1 %v2264_v27 }
 0x2e2   : > { %2079 = vmatprep.subr.bf16.mxu1 %v2510_v38 }
 0x2e3   : > { %1577 = vmatpush1.bf16.msra.mxu0 %v2771_v32  ;;  %v2268_v32 = vld [vmem:[#allocation10 + $0x80] ss:$12 sps:$4 sm:$0xff]  }
 0x2e4   : > { %1578 = vmatprep.subr.bf16.mxu0 %v2775_v34  ;;  %v2269_v34 = vld [vmem:[#allocation10 + $0x98] ss:$12 sps:$4 sm:$0xff]  }
 0x2e5   : > { %2080 = vmatpush3.bf16.msra.mxu1 %v2265_v28 }
 0x2e6   : > { %2081 = vmatprep.subr.bf16.mxu1 %v2510_v38 }
 0x2e7   : > { %1579 = vmatpush1.bf16.msra.mxu0 %v2778_v36  ;;  %v2270_v36 = vld [vmem:[#allocation10 + $0xb0] ss:$12 sps:$4 sm:$0xff]  }
 0x2e8   : > { %1580 = vmatprep.subr.bf16.mxu0 %v2780_v37 }
 0x2e9   : > { %2082 = vmatpush3.bf16.msra.mxu1 %v2266_v30 }
 0x2ea   : > { %2083 = vmatprep.subr.bf16.mxu1 %v2510_v38 }
 0x2eb   : > { %1581 = vmatpush1.bf16.msra.mxu0 %v2786_v40 }
 0x2ec   : > { %1582 = vmatprep.subr.bf16.mxu0 %v2790_v41 }
 0x2ed   : > { %2084 = vmatpush3.bf16.msra.mxu1 %v2267_v31 }
 0x2ee   : > { %2085 = vmatprep.subr.bf16.mxu1 %v2510_v38 }
 0x2ef   : > { %1583 = vmatpush1.bf16.msra.mxu0 %v2795_v43 }
 0x2f0   : > { %1584 = vmatprep.subr.bf16.mxu0 %v2797_v44 }
 0x2f1   : > { %2086 = vmatpush3.bf16.msra.mxu1 %v2268_v32 }
 0x2f2   : > { %2087 = vmatprep.subr.bf16.mxu1 %v2510_v38 }
 0x2f3   : > { %1585 = vmatpush1.bf16.msra.mxu0 %v2802_v46 }
 0x2f4   : > { %1586 = vmatprep.subr.bf16.mxu0 %v2807_v47 }
 0x2f5   : > { %2088 = vmatpush3.bf16.msra.mxu1 %v2269_v34 }
 0x2f6   : > { %2089 = vmatprep.subr.bf16.mxu1 %v2510_v38 }
 0x2f7   : > { %1587 = vmatpush1.bf16.msra.mxu0 %v2811_v49 }
 0x2f9   : > { %2090 = vmatpush3.bf16.msra.mxu1 %v2270_v36 }
 0x3ad   : > { %v1337_v37 = vpop.f32.mrb[16].mxu0  ;;  %v1378_v40 = vpop.f32.mrb[12].mxu1 }
 0x3ae   : > { %v1384_v41 = vadd.f32 %v1337_v37, %v2858_v16  ;;  %v1339_v43 = vpop.f32.mrb[17].mxu0  ;;  %v2073_v44 = vpop.f32.mrb[13].mxu1 }
 0x3af   : > { %v1391_v46 = vadd.f32 %v1339_v43, %v2860_v18  ;;  %v1341_v47 = vpop.f32.mrb[18].mxu0  ;;  %v1381_v49 = vpop.f32.mrb[14].mxu1 }
 0x3b0   : > { %v1912_v39 = vmul.f32 -1.442695, %v1384_v41  ;;  %v1342_v8 = vpop.f32.mrb[19].mxu0  ;;  %v2074_v9 = vpop.f32.mrb[15].mxu1 }
 0x3b1   : > { %v1913_v11 = vmul.f32 -1.442695, %v1391_v46 }
 0x3b2   : > { %2291 = vpow2.f32 %v1912_v39 }
 0x3b3   : > { %2293 = vpow2.f32 %v1913_v11 }
 0x3bc   : > { %v2292_v12 = vpop.eup %2291 }
 0x3bd   : > { %v1388_v38 = vadd.f32 1.0, %v2292_v12  ;;  %v2294_v15 = vpop.eup %2293 }
 0x3be   : > { %v1395_v17 = vadd.f32 1.0, %v2294_v15 }
 0x3bf   : > { %2295 = vrcp.f32 %v1388_v38 }
 0x3c0   : > { %2297 = vrcp.f32 %v1395_v17 }
 0x3c9   : > { %v2296_v50 = vpop.eup %2295 }
 0x3ca   : > { %v1398_v16 = vmul.f32 %v2296_v50, %v1378_v40  ;;  %v2298_v18 = vpop.eup %2297 }
 0x3cb   : > { %v1401_v19 = vsub.f32 1.0, %v2298_v18  ;;  %v1403_v24 = vmul.f32 %v2298_v18, %v2910_v6 }
 0x3cc   : > { %v1399_v14 = vadd.f32 %v1398_v16, %v2864_v23 }
 0x3ce   : > { %2299 = vtanh.f32 %v1399_v14 }
 0x3d8   : > { %v2300_v20 = vpop.eup %2299 }
 0x3d9   : > { %v1402_v22 = vmul.f32 %v2300_v20, %v1401_v19 }
 0x3db   : > { %v1404_v25 = vadd.f32 %v1403_v24, %v1402_v22 }
 0x3dd   : > { %1914 = vst [vmem:[%s2751_s9 + $0x10] sm:$0xff] %v1404_v25  ;;  %v1411_v29 = vpack.c.bf16 %v1404_v25, %v1404_v25 }
 0x3df   : > { %1605 = vmatmul.mubr.bf16.vlgmr.msra.gmra.mrb[20].mxu0 %v1411_v29  ;;  %2092 = vmatmul.mubr.bf16.vlgmr.msra.gmra.mrb[16].mxu1 %v1411_v29 }
 0x4b2   : > { %v1606_v35 = vpop.f32.mrb[20].mxu0  ;;  %v1647_v42 = vpop.f32.mrb[16].mxu1 }
 0x4b3   : > { %v1653_v45 = vadd.f32 %v1606_v35, %v2862_v21  ;;  %v1608_v48 = vpop.f32.mrb[21].mxu0  ;;  %v2093_v51 = vpop.f32.mrb[17].mxu1 }
 0x4b4   : > { %v1660_v23 = vadd.f32 %v1608_v48, %v2866_v26  ;;  %v1610_v52 = vpop.f32.mrb[22].mxu0  ;;  %v1650_v53 = vpop.f32.mrb[18].mxu1 }
 0x4b5   : > { %v1939_v54 = vmul.f32 -1.442695, %v1653_v45  ;;  %v1611_v55 = vpop.f32.mrb[23].mxu0  ;;  %v2094_v56 = vpop.f32.mrb[19].mxu1 }
 0x4b6   : > { %v1940_v57 = vmul.f32 -1.442695, %v1660_v23 }
 0x4b7   : > { %2301 = vpow2.f32 %v1939_v54 }
 0x4b8   : > { %2303 = vpow2.f32 %v1940_v57 }
 0x4c1   : > { %v2302_v58 = vpop.eup %2301 }
 0x4c2   : > { %v1657_v59 = vadd.f32 1.0, %v2302_v58  ;;  %v2304_v60 = vpop.eup %2303 }
 0x4c3   : > { %v1664_v61 = vadd.f32 1.0, %v2304_v60 }
 0x4c4   : > { %2305 = vrcp.f32 %v1657_v59 }
 0x4c5   : > { %2307 = vrcp.f32 %v1664_v61 }
 0x4ce   : > { %v2306_v21 = vpop.eup %2305 }
 0x4cf   : > { %v1667_v62 = vmul.f32 %v2306_v21, %v1647_v42  ;;  %v2308_v63 = vpop.eup %2307 }
 0x4d0   : > { %v1670_v10 = vsub.f32 1.0, %v2308_v63  ;;  %v1672_v1 = vmul.f32 %v2308_v63, %v1404_v25 }
 0x4d1   : > { %v1668_v26 = vadd.f32 %v1667_v62, %v2868_v33 }
 0x4d3   : > { %2309 = vtanh.f32 %v1668_v26 }
 0x4dd   : > { %v2310_v0 = vpop.eup %2309 }
 0x4de   : > { %v1671_v13 = vmul.f32 %v2310_v0, %v1670_v10 }
 0x4e0   : > { %v1673_v33 = vadd.f32 %v1672_v1, %v1671_v13 }
 0x4e2   : > { %1676 = vst [vmem:[#allocation2] sm:$0xff] %v1673_v33  ;;  %1941 = vst [vmem:[%s2751_s9 + $0x18] sm:$0xff] %v1673_v33 }
 0x4e3   : > { %2438 = shalt.err (!%p2435_p13)
}
 0x4e4   : > { %s2439_s7 = scalar_lea.hbm %s2954_s16, 512  ;;  %s2443_s9 = scalar_lea.hbm %s3006_s5, 1024 }
 0x4e5   : > { %p2440_p5 = scmp.ne.s32.totalorder %s2954_s16, %s2439_s7  ;;  %p2444_p10 = scmp.lt.u32.totalorder %s2954_s16, %s3006_s5 }
 0x4e6   : > { %p2445_p2 = scmp.lt.u32.totalorder %s2443_s9, %s2439_s7  ;;  %p2447_p4 = scmp.lt.u32.totalorder %s2439_s7, %s2954_s16 }
 0x4e7   : > { %p2441_p12 = pnand %p2440_p5, %p2684_p6 }
 0x4e8   : > { %p2446_p1 = por %p2445_p2, %p2444_p10 }
 0x4e9   : > { %p2442_p8 = pneg %p2441_p12 }
 0x4ea   : > { %p2448_p9 = por %p2447_p4, %p2446_p1 }
 0x4ec   : > { %p2449_p3 = pnand %p2448_p9, %p2442_p8 }
 0x4ee   : > { %2452 = shalt.err (!%p2449_p3)
}
 0x4ef   : > { %s2513_s12 = smov 128   ;;  %s2514_s29 = smov 8  }
 0x4f0   : > { %2109 = dma.vmem_to_hbm [thread:$0]  (%p2684_p6), %s2956_s13, 512, %s2954_s16, %s1678_s10, %s2513_s12, %s2513_s12, %s2514_s29  }
 0x4f1 PF: > { %s1706_s15 = sand.u32 1, %s2487_s18   ;;  %p3025_p7 = scmp.ne.s32.totalorder %s3011_s25, 0 }
 0x4f2   : > { %p3026_p11 = scmp.ge.s32.totalorder %s2499_s21, 2  ;;  %s1707_s30 = scalar_lea.sflag [#allocation6], %s1706_s15 }
 0x4f4   : > { %p2126_p0 = pnand %p3026_p11, %p3025_p7 }
 0x4f6   : > { %2482 = dma.done.wait (!%p2126_p0), %s1707_s30, 512  }
 0x4f7   : > { %2484 = vsyncadd (!%p2126_p0), %s1707_s30, 4294966784  ;;  %p20_p13 = scmp.ge.s32.totalorder %s2670_s14, 4   ;;  %s3027_s18 = smov %s2491_s19 }
 0x4f8   : > { %s3028_s19 = smov %s2495_s20  ;;  %s3029_s20 = smov %s2680_s23 }
 0x4f9   : > { %s3030_s21 = smov %s2670_s14  ;;  %22 = sbr.rel (!%p20_p13) target bundleno = 7 (0x7), region = 107 }
 0x500   :  { %1712 = vsyncpa [#allocation5], 1 }
 0x501   :  { %1714 = vsyncpa [#allocation5 + $0x1], 1 }
 0x502   :  { %1715 = vsyncpa [#allocation8], 1 }
 0x503   :  { %1716 = vsyncpa [#allocation11], 1 }
 0x504   :  { %1717 = vsyncpa [#allocation6], 1 }
 0x505   :  { %1719 = vsyncpa [#allocation6 + $0x1], 1 }

</bundles_post_ra>
